<compile_context>
chip_gen: v7x
topology: tpu7x:2x2x1
jax: 0.10.0
libtpu: 0.0.40
codegen_flags: <defaults>
</compile_context>

<pallas_src>
import jax
import jax.numpy as jnp
from jax.experimental import pallas as pl
from jax.experimental.pallas import tpu as pltpu


# ---------------------------------------------------------------------------
# Pass 1: per-(batch, channel) spatial sum.
# grid = (B, n_spatial_tiles), reduction axis last, output block resident
# across it (standard accumulator pattern).
# ---------------------------------------------------------------------------
def _ccg_reduce_kernel(x_ref, sum_ref):
    # x_ref: (1, C, T)   sum_ref: (1, C, 1) f32 accumulator (resident over s)
    s = pl.program_id(1)

    @pl.when(s == 0)
    def _init():
        sum_ref[...] = jnp.zeros_like(sum_ref)

    # f32 accumulation without materializing an f32 copy of the x tile.
    sum_ref[...] += jnp.sum(x_ref[...], axis=-1, keepdims=True,
                            dtype=jnp.float32)


# ---------------------------------------------------------------------------
# Pass 2: bandwidth-bound elementwise gating  out = x * gate[b, c].
# ---------------------------------------------------------------------------
def _ccg_gate_kernel(g_ref, x_ref, o_ref):
    # g_ref: (1, C, 1) f32    x_ref / o_ref: (1, C, T) in the input dtype
    x = x_ref[...]
    g = g_ref[...].astype(x.dtype)      # cast the tiny gate, never the x tile
    o_ref[...] = x * g                  # (1, C, 1) broadcasts over lanes


def _pick_spatial_tile(hw, c, dtype_bytes, block_budget_bytes=2 * 1024 * 1024):
    """Largest multiple-of-128 divisor of hw whose (C, T) tile fits the budget."""
    if hw % 128 != 0:
        return hw                       # full-extent block (equals the dim)
    max_lanes = block_budget_bytes // max(1, c * dtype_bytes)
    max_lanes = max(128, min(max_lanes, 4096, hw))
    best = 128
    t = 128
    while t <= max_lanes:
        if hw % t == 0:
            best = t
        t += 128
    return best


def ccg(x, max_kernel=5):
    """CCG forward: x (B, C, H, W) -> (B, C, H, W)."""
    B, C, H, W = x.shape
    HW = H * W

    kernel_size = min(max(3, C // 32), max_kernel)
    padding = (kernel_size - 1) // 2
    # The reference module only works for odd kernel sizes (even k makes the
    # conv output C-1 channels and the broadcast fails); keep that contract.
    assert kernel_size % 2 == 1, "CCG requires an odd channel kernel size"

    x_flat = x.reshape(B, C, HW)
    dtype_bytes = jnp.dtype(x.dtype).itemsize
    T = _pick_spatial_tile(HW, C, dtype_bytes)
    n_s = HW // T

    vmem_limit = 32 * 1024 * 1024  # safe on v5e/v6e/v7x given ~2 MiB blocks

    # ---- pass 1: spatial sums, (B, C, 1) f32 -------------------------------
    sums = pl.pallas_call(
        _ccg_reduce_kernel,
        out_shape=jax.ShapeDtypeStruct((B, C, 1), jnp.float32),
        grid_spec=pltpu.PrefetchScalarGridSpec(
            num_scalar_prefetch=0,
            grid=(B, n_s),
            in_specs=[pl.BlockSpec((1, C, T), lambda b, s: (b, 0, s))],
            out_specs=pl.BlockSpec((1, C, 1), lambda b, s: (b, 0, 0)),
        ),
        compiler_params=pltpu.CompilerParams(
            dimension_semantics=("parallel", "arbitrary"),
            vmem_limit_bytes=vmem_limit,
        ),
    )(x_flat)

    # ---- tiny (B, C) gate computation in plain XLA -------------------------
    mean = sums[:, :, 0] * (1.0 / HW)                        # (B, C) f32
    yp = jnp.pad(mean, ((0, 0), (padding, padding)))
    mov = yp[:, 0:C]
    for d in range(1, kernel_size):                          # <=5 shifted adds
        mov = mov + yp[:, d:d + C]
    mov = mov * (1.0 / kernel_size)
    gate = jnp.clip(mov * (1.0 / 6.0) + 0.5, 0.0, 1.0)       # hardsigmoid
    gate = gate[:, :, None]                                  # (B, C, 1) f32

    # ---- pass 2: gating, grid (B, HW // T), both axes parallel -------------
    out_flat = pl.pallas_call(
        _ccg_gate_kernel,
        out_shape=jax.ShapeDtypeStruct((B, C, HW), x.dtype),
        grid_spec=pltpu.PrefetchScalarGridSpec(
            num_scalar_prefetch=0,
            grid=(B, n_s),
            in_specs=[
                pl.BlockSpec((1, C, 1), lambda b, s: (b, 0, 0)),
                pl.BlockSpec((1, C, T), lambda b, s: (b, 0, s)),
            ],
            out_specs=pl.BlockSpec((1, C, T), lambda b, s: (b, 0, s)),
        ),
        compiler_params=pltpu.CompilerParams(
            dimension_semantics=("parallel", "parallel"),
            vmem_limit_bytes=vmem_limit,
        ),
    )(gate, x_flat)

    return out_flat.reshape(B, C, H, W)


def _reference_ccg(x, max_kernel=5):
    # pure-JAX reference (independent formulation) for sanity check
    B, C, H, W = x.shape
    k = min(max(3, C // 32), max_kernel)
    p = (k - 1) // 2
    y = x.astype(jnp.float32).mean(axis=(-2, -1))            # (B, C)
    yp = jnp.pad(y, ((0, 0), (p, p)))
    ymov = jnp.stack([yp[:, i:i + k].sum(axis=-1) for i in range(C)],
                     axis=-1) / k
    g = jnp.clip(ymov / 6.0 + 0.5, 0.0, 1.0)
    return (x.astype(jnp.float32) * g[:, :, None, None]).astype(x.dtype)


if __name__ == "__main__":
    key = jax.random.PRNGKey(0)
    B, C, H, W = 2, 4, 16, 16
    x = jax.random.normal(key, (B, C, H, W), dtype=jnp.float32)

    out = jax.block_until_ready(ccg(x, max_kernel=5))
    ref = _reference_ccg(x, max_kernel=5)

    assert out.shape == (B, C, H, W)
    assert jnp.allclose(out, ref, atol=1e-5, rtol=1e-5), "mismatch vs reference"

    print("KERNEL_OK")
</pallas_src>

<mosaic_0001>
module attributes {stable_mosaic.version = 11 : i64} {
  func.func @_ccg_reduce_kernel(%arg0: i32, %arg1: i32, %arg2: memref<1x4x256xf32, #tpu.memory_space<vmem>>, %arg3: memref<1x4x1xf32, #tpu.memory_space<vmem>>) attributes {dimension_semantics = [#tpu.dimension_semantics<parallel>, #tpu.dimension_semantics<arbitrary>], iteration_bounds = array<i64: 2, 1>, scalar_prefetch = 0 : i64, scratch_operands = 0 : i64, tpu.core_type = #tpu.core_type<tc>, window_params = [{transform_indices = @transform_0, window_bounds = array<i64: 1, 4, 256>}, {transform_indices = @transform_1, window_bounds = array<i64: 1, 4, 1>}]} {
    %c0_i32 = arith.constant 0 : i32
    %0 = arith.cmpi eq, %arg1, %c0_i32 : i32
    %1 = arith.extui %0 : i1 to i32
    %c0_i32_0 = arith.constant 0 : i32
    %2 = arith.cmpi ne, %1, %c0_i32_0 : i32
    scf.if %2 {
      %cst_9 = arith.constant 0.000000e+00 : f32
      %9 = vector.broadcast %cst_9 : f32 to vector<1x4x1xf32>
      %c0_10 = arith.constant 0 : index
      %c0_11 = arith.constant 0 : index
      %c0_12 = arith.constant 0 : index
      %10 = vector.load %arg3[%c0_10, %c0_11, %c0_12] : memref<1x4x1xf32, #tpu.memory_space<vmem>>, vector<1x4x1xf32>
      tpu.vector_store %arg3[%c0_10, %c0_11, %c0_12], %9 {strides = array<i32>} : memref<1x4x1xf32, #tpu.memory_space<vmem>>, vector<1x4x1xf32>,
    } else {
    }
    %c0 = arith.constant 0 : index
    %c0_1 = arith.constant 0 : index
    %c0_2 = arith.constant 0 : index
    %3 = vector.load %arg3[%c0, %c0_1, %c0_2] : memref<1x4x1xf32, #tpu.memory_space<vmem>>, vector<1x4x1xf32>
    %c0_3 = arith.constant 0 : index
    %c0_4 = arith.constant 0 : index
    %c0_5 = arith.constant 0 : index
    %4 = vector.load %arg2[%c0_3, %c0_4, %c0_5] : memref<1x4x256xf32, #tpu.memory_space<vmem>>, vector<1x4x256xf32>
    %cst = arith.constant dense<0.000000e+00> : vector<1x4xf32>
    %5 = vector.multi_reduction <add>, %4, %cst [2] : vector<1x4x256xf32> to vector<1x4xf32>
    %6 = vector.shape_cast %5 : vector<1x4xf32> to vector<1x4x1xf32>
    %7 = arith.addf %3, %6 : vector<1x4x1xf32>
    %c0_6 = arith.constant 0 : index
    %c0_7 = arith.constant 0 : index
    %c0_8 = arith.constant 0 : index
    %8 = vector.load %arg3[%c0_6, %c0_7, %c0_8] : memref<1x4x1xf32, #tpu.memory_space<vmem>>, vector<1x4x1xf32>
    tpu.vector_store %arg3[%c0_6, %c0_7, %c0_8], %7 {strides = array<i32>} : memref<1x4x1xf32, #tpu.memory_space<vmem>>, vector<1x4x1xf32>,
    return
  }
  func.func @transform_0(%arg0: i32, %arg1: i32) -> (i32, i32, i32) {
    %c0_i32 = arith.constant 0 : i32
    %c0_i32_0 = arith.constant 0 : i32
    return %arg0, %c0_i32, %arg1 : i32, i32, i32
  }
  func.func @transform_1(%arg0: i32, %arg1: i32) -> (i32, i32, i32) {
    %c0_i32 = arith.constant 0 : i32
    %c0_i32_0 = arith.constant 0 : i32
    %c0_i32_1 = arith.constant 0 : i32
    return %arg0, %c0_i32, %c0_i32_0 : i32, i32, i32
  }
}

</mosaic_0001>

<bundles_post_ra>
// kernel: tpu_custom_call.1
= control target key start
LH: loop header
LB: loop body
LE: loop exit
PB: predicated region body
PF: predicated region fallthrough
CT: control target
= control target key end

     0   :  { %6 = vsyncpa [#allocation3], 0  ;;  %s535_s0 = inlined_call_operand.hbm [shape: f32[2,4,256], index: 0, kind: input, shape index: {}]   ;;  %s536_s1 = inlined_call_operand.vmem [shape: f32[2,4,1], index: 1, kind: output, shape index: {}]  }
   0x1   :  { %8 = vsyncpa [#allocation3 + $0x1], 0  ;;  %s410_s6 = smov 0   ;;  %s412_s7 = smov 0  }
   0x2   :  { %s414_s8 = smov 0   ;;  %s416_s9 = smov 0  }
   0x3   :  { %s418_s10 = smov 0   ;;  %s420_s11 = smov 0  }
   0x4 LB: > { %s246_s12 = sadd.s32 4294967295, %s396_s11   ;;  %s26_s13 = sadd.s32 1, %s392_s10  ;;  %s396_s11 = sphi %s420_s11, %s14_s11   ;;  %s392_s10 = sphi %s418_s10, %s546_s10   ;;  %s388_s9 = sphi %s416_s9, %s545_s9   ;;  %s384_s8 = sphi %s414_s8, %s544_s8   ;;  %s380_s7 = sphi %s412_s7, %s543_s7   ;;  %s376_s6 = sphi %s410_s6, %s542_s6  }
   0x5   : > { %p28_p0 = scmp.ge.s32.totalorder %s26_s13, 2  ;;  %s35_s14 = sadd.s32 1, %s384_s8 }
   0x6   : > { %p42_p1 = scmp.ne.s32.totalorder %s384_s8, %s380_s7  ;;  %p43_p2 = scmp.eq.s32.totalorder %s396_s11, 0 }
   0x7   : > { %s548_s13 = smov (%p28_p0, %s26_s13), 0  ;;  %p48_p4 = scmp.ne.s32.totalorder %s380_s7, %s376_s6 }
   0x8   : > { %p446_p3 = por %p43_p2, %p42_p1  ;;  %s30_s16 = ssub.s32 %s392_s10, %s548_s13 }
   0x9   : > { %p49_p5 = scmp.eq.s32.totalorder %s246_s12, 0  ;;  %p33_p6 = scmp.eq.s32.totalorder %s30_s16, 0 }
   0xa   : > { %p265_p8 = scmp.lt.s32.totalorder %s396_s11, 2  ;;  %s98_s19 = sand.u32 1, %s384_s8  }
   0xb   : > { %p453_p7 = por %p49_p5, %p48_p4  ;;  %s258_s20 = sshll.u32 %s392_s10, 7 }
   0xc   : > { %s459_s18 = scalar_select %p33_p6, %s384_s8, %s35_s14  }
   0xd   : > { %s250_s21 = sshll.u32 %s98_s19, 3  ;;  %s466_s24 = scalar_lea.hbm %s535_s0, %s258_s20 }
   0xe   : > { %s102_s25 = scalar_lea.vmem [#allocation2], %s250_s21  ;;  %p470_p9 = pnand %p265_p8, %p446_p3 }
   0xf   : > { %s112_s26 = sshll.u32 %s102_s25, 4  ;;  %s99_s28 = scalar_lea.sflag [#allocation3], %s98_s19  ;;  %s474_s26 = int_to_ptr.vmem [resolvable:$true] %s112_s26 }
  0x10   : > { %s316_s29 = scalar_lea.hbm %s466_s24, 128  ;;  %p318_p13 = pneg %p470_p9 }
  0x11   : > { %p317_p12 = scmp.ne.s32.totalorder %s466_s24, %s316_s29  ;;  %s321_s3 = scalar_lea.hbm %s535_s0, 256 }
  0x12   : > { %p322_p2 = scmp.lt.u32.totalorder %s466_s24, %s535_s0  ;;  %p323_p3 = scmp.lt.u32.totalorder %s321_s3, %s316_s29 }
  0x13   : > { %p319_p0 = pnand %p318_p13, %p317_p12  ;;  %p325_p5 = scmp.lt.u32.totalorder %s316_s29, %s466_s24 }
  0x14   : > { %p324_p4 = por %p323_p3, %p322_p2 }
  0x15   : > { %p320_p1 = pneg %p319_p0 }
  0x16   : > { %p326_p6 = por %p325_p5, %p324_p4 }
  0x18   : > { %p327_p8 = pnand %p326_p6, %p320_p1 }
  0x1a   : > { %330 = shalt.err (!%p327_p8)
}
  0x1b   : > { %s331_s6 = scalar_lea.vmem %s474_s26, 128  ;;  %s398_s12 = smov [#allocation2]  }
  0x1c   : > { %p332_p12 = scmp.ne.s32.totalorder %s474_s26, %s331_s6  ;;  %s336_s14 = sshll.u32 %s398_s12, 4  ;;  %s337_s14 = int_to_ptr.vmem [resolvable:$false] %s336_s14 }
  0x1d   : > { %s338_s15 = scalar_lea.vmem %s337_s14, 256  ;;  %p339_p11 = scmp.lt.s32.totalorder %s474_s26, %s337_s14 }
  0x1e   : > { %p334_p0 = pnand %p332_p12, %p318_p13  ;;  %p340_p2 = scmp.lt.s32.totalorder %s338_s15, %s331_s6 }
  0x20   : > { %p335_p10 = pneg %p334_p0  ;;  %p341_p3 = por %p340_p2, %p339_p11 }
  0x22   : > { %p342_p4 = pnand %p341_p3, %p335_p10 }
  0x24   : > { %345 = shalt.err (!%p342_p4)
}
  0x25   : > { %264 = dma.hbm_to_vmem [thread:$0]  (!%p470_p9), %s466_s24, 128, %s474_s26, %s99_s28  }
  0x26   : > { %p540_p1 = scmp.lt.s32.totalorder %s396_s11, 3  ;;  %p541_p5 = scmp.ge.s32.totalorder %s396_s11, 1 }
  0x28   : > { %p118_p13 = pnand %p541_p5, %p540_p1 }
  0x29   : > { %s123_s16 = sand.u32 (!%p118_p13), 1, %s380_s7  }
  0x2a   : > { %121 = sbr.rel (%p118_p13) target bundleno = 201 (0xc9), region = 24  ;;  %s254_s19 = sshll.u32 (!%p118_p13), %s123_s16, 3 }
  0x2b   : > { %s124_s20 = scalar_lea.sflag (!%p118_p13), [#allocation3], %s123_s16  ;;  %s127_s21 = scalar_lea.vmem (!%p118_p13), [#allocation2], %s254_s19 }
  0x31   : > { %371 = dma.done.wait (%p453_p7), %s124_s20, 128  }
  0x32   : > { %373 = vsyncadd (%p453_p7), %s124_s20, 4294967168  ;;  %p146_p10 = scmp.lt.s32.totalorder %s388_s9, 1  ;;  %vm154_vm0 = vcmask 3072   ;;  %vm161_vm1 = vcmask 1043456   ;;  %v399_v0 = vmov 0.0   ;;  %v157_v1 = vld [vmem:[%s127_s21] sm:$0xff] }
  0x33   : > { %v159_v2 = vcombine.high %v157_v1, %v157_v1  ;;  %v162_v3 = vsel %vm161_vm1, %v157_v1, 0.0 }
  0x34   : > { %s550_s9 = smov (!%p146_p10, %s388_s9), 1 }
  0x35   : > { %s255_s22 = sshll.u32 %s550_s9, 2  ;;  %v163_v4 = vsel %vm161_vm1, %v159_v2, 0.0 }
  0x36   : > { %s149_s25 = scalar_lea.vmem %s536_s1, %s255_s22  ;;  %v164_v5 = vadd.f32 %v163_v4, %v162_v3 }
  0x37   : > { %155 = vst.msk [vmem:[%s149_s25] sm:$0xf] %vm154_vm0, %v399_v0 }
  0x38   : > { %165 = vadd.xlane.f32.xlu0 %v164_v5 }
  0x3e   : > { %v156_v6 = vld [vmem:[%s149_s25] sm:$0xf] }
  0xc5   : > { %v166_v7 = vpop.xlane.xlu0 %165 }
  0xc6   : > { %v167_v8 = vadd.f32 %v166_v7, %v156_v6 }
  0xc8   : > { %169 = vst.msk [vmem:[%s149_s25] sm:$0xf] %vm154_vm0, %v167_v8 }
  0xc9 PF: > { %s14_s11 = sadd.s32 1, %s396_s11   ;;  %s542_s6 = smov %s380_s7 }
  0xca   : > { %p11_p7 = scmp.ge.s32.totalorder %s14_s11, 4   ;;  %s543_s7 = smov %s384_s8 }
  0xcb   : > { %s544_s8 = smov %s459_s18  ;;  %s545_s9 = smov %s392_s10 }
  0xcc   : > { %s546_s10 = smov %s548_s13  ;;  %13 = sbr.rel (!%p11_p7) target bundleno = 4 (0x4), region = 68 }
  0xd3   :  { %189 = vsyncpa [#allocation3], 1 }
  0xd4   :  { %191 = vsyncpa [#allocation3 + $0x1], 1 }

</bundles_post_ra>
